<compile_context>
chip_gen: v7x
topology: tpu7x:2x2x1
jax: 0.10.0
libtpu: 0.0.40
codegen_flags: <defaults>
</compile_context>

<pallas_src>
import functools

import jax
import jax.numpy as jnp
from jax.experimental import pallas as pl
from jax.experimental.pallas import tpu as pltpu


def _cdiv(a, b):
    return (a + b - 1) // b


def _round_up(a, b):
    return _cdiv(a, b) * b


def _default_target_lanes():
    """v5e's MXU is natively 128 wide; v6e / v7x prefer K=256 packing."""
    try:
        kind = jax.devices()[0].device_kind.lower()
        if "v5" in kind:
            return 128
    except Exception:
        pass
    return 256


def _pack_factor(feature_dim, target_lanes):
    """Rows packed per lane-dense row so that r * F is a multiple of 128."""
    if feature_dim % 128 == 0:
        return 1
    for lanes in (target_lanes, 128):
        if lanes % feature_dim == 0:
            return lanes // feature_dim
    return 1  # F doesn't divide 128/256: no packing (stores will be masked)


def _pack_params(params, r, compute_dtype):
    """Block-diagonal expansion: W -> kron(I_r, W) [r*in, r*out], b -> tile(b, r)."""
    packed = []
    for name in ("fc1", "fc2", "fc3", "fc4"):
        w, b = params[name]
        if r > 1:
            w = jnp.kron(jnp.eye(r, dtype=w.dtype), w)
            b = jnp.tile(b, (1, r))
        packed.append(w.astype(compute_dtype))       # MXU operand dtype
        packed.append(b.astype(jnp.float32))          # bias added in f32
    return packed


def _autoencoder_kernel(x_ref,
                        w1_ref, b1_ref, w2_ref, b2_ref,
                        w3_ref, b3_ref, w4_ref, b4_ref,
                        o_ref, *, compute_dtype, approx_sigmoid):
    """One batch tile of the full encode->decode chain on lane-packed slabs."""

    def layer(h, w_ref, b_ref):
        acc = jnp.dot(h, w_ref[...], preferred_element_type=jnp.float32)
        acc = acc + b_ref[...]
        # sigmoid(x) = 1 / (1 + exp(-x)); exp + reciprocal both go to the EUP.
        return pl.reciprocal(1.0 + jnp.exp(-acc), approx=approx_sigmoid)

    h = x_ref[...].astype(compute_dtype)
    h = layer(h, w1_ref, b1_ref).astype(compute_dtype)   # embed: fc1
    h = layer(h, w2_ref, b2_ref).astype(compute_dtype)   # embed: fc2 (bottleneck)
    h = layer(h, w3_ref, b3_ref).astype(compute_dtype)   # reconstruct: fc3
    out = layer(h, w4_ref, b4_ref)                        # reconstruct: fc4 (f32)
    o_ref[...] = out.astype(o_ref.dtype)


def classical_autoencoder_forward(x, params, *, batch_tile=4096,
                                  io_dtype=jnp.bfloat16,
                                  compute_dtype=jnp.bfloat16,
                                  approx_sigmoid=True,
                                  target_lanes=None):
    """Forward pass of the autoencoder.

    x: [B, input_size] float array.
    params: dict name -> (w, b) with w as [in, out], b as [1, out].
    io_dtype / compute_dtype: HBM-boundary and MXU-operand dtypes (bf16 default;
        accumulation and sigmoids always run in f32).  Pass io_dtype=None,
        compute_dtype=jnp.float32, approx_sigmoid=False for an exact f32 path.
    """
    orig_dtype = x.dtype
    B, F = x.shape

    if target_lanes is None:
        target_lanes = _default_target_lanes()
    r = _pack_factor(F, target_lanes)
    row_align = 8 * r                      # packed sublane dim stays a multiple of 8

    if io_dtype is not None and x.dtype != io_dtype:
        x = x.astype(io_dtype)
    store_dtype = x.dtype

    # Tiny alignment pad only (< 8*r rows); tile-boundary handling relies on
    # Pallas partial-block masking, never on padding to a full tile.
    B_pad = _round_up(B, row_align)
    if B_pad != B:
        x = jnp.pad(x, ((0, B_pad - B), (0, 0)))

    packed_cols = r * F
    x_packed = x.reshape(B_pad // r, packed_cols)        # row-major: free reshape

    # Adaptive tile: big tiles to amortise per-step overhead, but >= 2 grid
    # steps when the batch allows so both v7x TensorCores are used.
    min_steps = 2 if B_pad >= 2 * row_align else 1
    n_steps0 = max(min_steps, _cdiv(B_pad, batch_tile))
    tile_rows = min(_round_up(_cdiv(B_pad, n_steps0), row_align), B_pad)
    n_steps = _cdiv(B_pad, tile_rows)

    weights = _pack_params(params, r, compute_dtype)

    kernel = functools.partial(_autoencoder_kernel,
                               compute_dtype=compute_dtype,
                               approx_sigmoid=approx_sigmoid)

    full = lambda arr: pl.BlockSpec(arr.shape, lambda i: (0, 0))
    io_spec = pl.BlockSpec((tile_rows // r, packed_cols), lambda i: (i, 0))

    out_packed = pl.pallas_call(
        kernel,
        out_shape=jax.ShapeDtypeStruct((B_pad // r, packed_cols), store_dtype),
        grid_spec=pltpu.PrefetchScalarGridSpec(
            num_scalar_prefetch=0,
            grid=(n_steps,),
            in_specs=[io_spec] + [full(w) for w in weights],
            out_specs=io_spec,
        ),
        compiler_params=pltpu.CompilerParams(
            dimension_semantics=("parallel",),          # batch axis shards across TCs
            vmem_limit_bytes=32 * 1024 * 1024),         # safe on all generations
    )(x_packed, *weights)

    out = out_packed.reshape(B_pad, F)
    if B_pad != B:
        out = out[:B]
    if out.dtype != orig_dtype:
        out = out.astype(orig_dtype)
    return out


def init_params(key, input_size, intermediate_size, embedding_size,
                dtype=jnp.float32):
    """Mimics torch.nn.Linear's U(-1/sqrt(fan_in), 1/sqrt(fan_in)) init.
    Weights stored as [in, out] (transposed vs. PyTorch)."""
    dims = [(input_size, intermediate_size),
            (intermediate_size, embedding_size),
            (embedding_size, intermediate_size),
            (intermediate_size, input_size)]
    names = ["fc1", "fc2", "fc3", "fc4"]
    params = {}
    for name, (fan_in, fan_out) in zip(names, dims):
        key, kw, kb = jax.random.split(key, 3)
        bound = 1.0 / jnp.sqrt(jnp.float32(fan_in))
        w = jax.random.uniform(kw, (fan_in, fan_out), dtype, -bound, bound)
        b = jax.random.uniform(kb, (1, fan_out), dtype, -bound, bound)
        params[name] = (w, b)
    return params


def _reference_forward(x, params):
    h = x.astype(jnp.float32)
    for name in ("fc1", "fc2", "fc3", "fc4"):
        w, b = params[name]
        z = jnp.dot(h, w, precision=jax.lax.Precision.HIGHEST) + b
        h = 1.0 / (1.0 + jnp.exp(-z))
    return h


if __name__ == "__main__":
    input_size = 64
    intermediate_size = 32
    embedding_size = 16

    key = jax.random.PRNGKey(0)
    key, kx1, kx2, kx3 = jax.random.split(key, 4)
    params = init_params(key, input_size, intermediate_size, embedding_size)

    # --- exact-parity path: f32 compute, f32 I/O, exact reciprocal ---
    batch = 2
    x = jax.random.normal(kx1, (batch, input_size), jnp.float32)
    ref = _reference_forward(x, params)
    out_exact = jax.block_until_ready(
        classical_autoencoder_forward(
            x, params, io_dtype=None, compute_dtype=jnp.float32,
            approx_sigmoid=False))
    assert out_exact.shape == (batch, input_size)
    assert jnp.allclose(out_exact, ref, atol=1e-5, rtol=1e-5), "f32 parity mismatch"

    # --- default fast path: bf16 MXU operands + bf16 HBM I/O (f32 accumulation) ---
    out_fast = jax.block_until_ready(classical_autoencoder_forward(x, params))
    assert out_fast.shape == (batch, input_size)
    assert out_fast.dtype == x.dtype
    assert jnp.allclose(out_fast, ref, atol=5e-2), "bf16 fast-path mismatch"

    # --- multi-step grid + alignment pad (batch not a multiple of 8*r) ---
    batch2 = 37
    x2 = jax.random.normal(kx2, (batch2, input_size), jnp.float32)
    ref2 = _reference_forward(x2, params)
    out2 = jax.block_until_ready(
        classical_autoencoder_forward(x2, params, batch_tile=16))
    assert out2.shape == (batch2, input_size)
    assert jnp.allclose(out2, ref2, atol=5e-2), "multi-tile mismatch"

    # --- partial last grid block (tile does not divide the aligned batch) ---
    batch3 = 72
    x3 = jax.random.normal(kx3, (batch3, input_size), jnp.float32)
    ref3 = _reference_forward(x3, params)
    out3 = jax.block_until_ready(
        classical_autoencoder_forward(x3, params, batch_tile=64))
    assert out3.shape == (batch3, input_size)
    assert jnp.allclose(out3, ref3, atol=5e-2), "partial-block mismatch"

    print("KERNEL_OK")
</pallas_src>

<mosaic_0001>
module attributes {stable_mosaic.version = 11 : i64} {
  func.func @_autoencoder_kernel(%arg0: i32, %arg1: memref<8x256xf32, #tpu.memory_space<vmem>>, %arg2: memref<256x128xf32, #tpu.memory_space<vmem>>, %arg3: memref<1x128xf32, #tpu.memory_space<vmem>>, %arg4: memref<128x64xf32, #tpu.memory_space<vmem>>, %arg5: memref<1x64xf32, #tpu.memory_space<vmem>>, %arg6: memref<64x128xf32, #tpu.memory_space<vmem>>, %arg7: memref<1x128xf32, #tpu.memory_space<vmem>>, %arg8: memref<128x256xf32, #tpu.memory_space<vmem>>, %arg9: memref<1x256xf32, #tpu.memory_space<vmem>>, %arg10: memref<8x256xf32, #tpu.memory_space<vmem>>) attributes {dimension_semantics = [#tpu.dimension_semantics<parallel>], iteration_bounds = array<i64: 1>, scalar_prefetch = 0 : i64, scratch_operands = 0 : i64, tpu.core_type = #tpu.core_type<tc>, window_params = [{transform_indices = @transform_0, window_bounds = array<i64: 8, 256>}, {pipeline_mode = #tpu.pipeline_mode<synchronous>, transform_indices = @transform_1, window_bounds = array<i64: 256, 128>}, {pipeline_mode = #tpu.pipeline_mode<synchronous>, transform_indices = @transform_2, window_bounds = array<i64: 1, 128>}, {pipeline_mode = #tpu.pipeline_mode<synchronous>, transform_indices = @transform_3, window_bounds = array<i64: 128, 64>}, {pipeline_mode = #tpu.pipeline_mode<synchronous>, transform_indices = @transform_4, window_bounds = array<i64: 1, 64>}, {pipeline_mode = #tpu.pipeline_mode<synchronous>, transform_indices = @transform_5, window_bounds = array<i64: 64, 128>}, {pipeline_mode = #tpu.pipeline_mode<synchronous>, transform_indices = @transform_6, window_bounds = array<i64: 1, 128>}, {pipeline_mode = #tpu.pipeline_mode<synchronous>, transform_indices = @transform_7, window_bounds = array<i64: 128, 256>}, {pipeline_mode = #tpu.pipeline_mode<synchronous>, transform_indices = @transform_8, window_bounds = array<i64: 1, 256>}, {transform_indices = @transform_9, window_bounds = array<i64: 8, 256>}]} {
    %c0 = arith.constant 0 : index
    %c0_0 = arith.constant 0 : index
    %0 = vector.load %arg1[%c0, %c0_0] : memref<8x256xf32, #tpu.memory_space<vmem>>, vector<8x256xf32>
    %c0_1 = arith.constant 0 : index
    %c0_2 = arith.constant 0 : index
    %1 = vector.load %arg2[%c0_1, %c0_2] : memref<256x128xf32, #tpu.memory_space<vmem>>, vector<256x128xf32>
    %cst = arith.constant dense<0.000000e+00> : vector<8x128xf32>
    %2 = tpu.matmul %0, %1, %cst {dimension_numbers = #tpu.dot_dimension_numbers<[1], [0], [0], [1], [0, 0, 1, 1], [], []>} : vector<8x256xf32>, vector<256x128xf32>, vector<8x128xf32> -> vector<8x128xf32>
    %c0_3 = arith.constant 0 : index
    %c0_4 = arith.constant 0 : index
    %3 = vector.load %arg3[%c0_3, %c0_4] : memref<1x128xf32, #tpu.memory_space<vmem>>, vector<1x128xf32>
    %4 = vector.broadcast %3 : vector<1x128xf32> to vector<8x128xf32>
    %5 = arith.addf %2, %4 : vector<8x128xf32>
    %cst_5 = arith.constant 0.000000e+00 : f32
    %6 = vector.broadcast %cst_5 : f32 to vector<8x128xf32>
    %7 = arith.subf %6, %5 : vector<8x128xf32>
    %8 = math.exp %7 : vector<8x128xf32>
    %cst_6 = arith.constant 1.000000e+00 : f32
    %9 = vector.broadcast %cst_6 : f32 to vector<8x128xf32>
    %10 = arith.addf %9, %8 : vector<8x128xf32>
    %11 = tpu.reciprocal %10 : vector<8x128xf32> -> vector<8x128xf32>
    %c0_7 = arith.constant 0 : index
    %c0_8 = arith.constant 0 : index
    %12 = vector.load %arg4[%c0_7, %c0_8] : memref<128x64xf32, #tpu.memory_space<vmem>>, vector<128x64xf32>
    %cst_9 = arith.constant dense<0.000000e+00> : vector<8x64xf32>
    %13 = tpu.matmul %11, %12, %cst_9 {dimension_numbers = #tpu.dot_dimension_numbers<[1], [0], [0], [1], [0, 0, 1, 1], [], []>} : vector<8x128xf32>, vector<128x64xf32>, vector<8x64xf32> -> vector<8x64xf32>
    %c0_10 = arith.constant 0 : index
    %c0_11 = arith.constant 0 : index
    %14 = vector.load %arg5[%c0_10, %c0_11] : memref<1x64xf32, #tpu.memory_space<vmem>>, vector<1x64xf32>
    %15 = vector.broadcast %14 : vector<1x64xf32> to vector<8x64xf32>
    %16 = arith.addf %13, %15 : vector<8x64xf32>
    %cst_12 = arith.constant 0.000000e+00 : f32
    %17 = vector.broadcast %cst_12 : f32 to vector<8x64xf32>
    %18 = arith.subf %17, %16 : vector<8x64xf32>
    %19 = math.exp %18 : vector<8x64xf32>
    %cst_13 = arith.constant 1.000000e+00 : f32
    %20 = vector.broadcast %cst_13 : f32 to vector<8x64xf32>
    %21 = arith.addf %20, %19 : vector<8x64xf32>
    %22 = tpu.reciprocal %21 : vector<8x64xf32> -> vector<8x64xf32>
    %c0_14 = arith.constant 0 : index
    %c0_15 = arith.constant 0 : index
    %23 = vector.load %arg6[%c0_14, %c0_15] : memref<64x128xf32, #tpu.memory_space<vmem>>, vector<64x128xf32>
    %cst_16 = arith.constant dense<0.000000e+00> : vector<8x128xf32>
    %24 = tpu.matmul %22, %23, %cst_16 {dimension_numbers = #tpu.dot_dimension_numbers<[1], [0], [0], [1], [0, 0, 1, 1], [], []>} : vector<8x64xf32>, vector<64x128xf32>, vector<8x128xf32> -> vector<8x128xf32>
    %c0_17 = arith.constant 0 : index
    %c0_18 = arith.constant 0 : index
    %25 = vector.load %arg7[%c0_17, %c0_18] : memref<1x128xf32, #tpu.memory_space<vmem>>, vector<1x128xf32>
    %26 = vector.broadcast %25 : vector<1x128xf32> to vector<8x128xf32>
    %27 = arith.addf %24, %26 : vector<8x128xf32>
    %cst_19 = arith.constant 0.000000e+00 : f32
    %28 = vector.broadcast %cst_19 : f32 to vector<8x128xf32>
    %29 = arith.subf %28, %27 : vector<8x128xf32>
    %30 = math.exp %29 : vector<8x128xf32>
    %cst_20 = arith.constant 1.000000e+00 : f32
    %31 = vector.broadcast %cst_20 : f32 to vector<8x128xf32>
    %32 = arith.addf %31, %30 : vector<8x128xf32>
    %33 = tpu.reciprocal %32 : vector<8x128xf32> -> vector<8x128xf32>
    %c0_21 = arith.constant 0 : index
    %c0_22 = arith.constant 0 : index
    %34 = vector.load %arg8[%c0_21, %c0_22] : memref<128x256xf32, #tpu.memory_space<vmem>>, vector<128x256xf32>
    %cst_23 = arith.constant dense<0.000000e+00> : vector<8x256xf32>
    %35 = tpu.matmul %33, %34, %cst_23 {dimension_numbers = #tpu.dot_dimension_numbers<[1], [0], [0], [1], [0, 0, 1, 1], [], []>} : vector<8x128xf32>, vector<128x256xf32>, vector<8x256xf32> -> vector<8x256xf32>
    %c0_24 = arith.constant 0 : index
    %c0_25 = arith.constant 0 : index
    %36 = vector.load %arg9[%c0_24, %c0_25] : memref<1x256xf32, #tpu.memory_space<vmem>>, vector<1x256xf32>
    %37 = vector.broadcast %36 : vector<1x256xf32> to vector<8x256xf32>
    %38 = arith.addf %35, %37 : vector<8x256xf32>
    %cst_26 = arith.constant 0.000000e+00 : f32
    %39 = vector.broadcast %cst_26 : f32 to vector<8x256xf32>
    %40 = arith.subf %39, %38 : vector<8x256xf32>
    %41 = math.exp %40 : vector<8x256xf32>
    %cst_27 = arith.constant 1.000000e+00 : f32
    %42 = vector.broadcast %cst_27 : f32 to vector<8x256xf32>
    %43 = arith.addf %42, %41 : vector<8x256xf32>
    %44 = tpu.reciprocal %43 : vector<8x256xf32> -> vector<8x256xf32>
    %c0_28 = arith.constant 0 : index
    %c0_29 = arith.constant 0 : index
    %45 = vector.load %arg10[%c0_28, %c0_29] : memref<8x256xf32, #tpu.memory_space<vmem>>, vector<8x256xf32>
    tpu.vector_store %arg10[%c0_28, %c0_29], %44 {strides = array<i32>} : memref<8x256xf32, #tpu.memory_space<vmem>>, vector<8x256xf32>,
    return
  }
  func.func @transform_0(%arg0: i32) -> (i32, i32) {
    %c0_i32 = arith.constant 0 : i32
    %c0_i32_0 = arith.constant 0 : i32
    return %arg0, %c0_i32 : i32, i32
  }
  func.func @transform_1(%arg0: i32) -> (i32, i32) {
    %c0_i32 = arith.constant 0 : i32
    %c0_i32_0 = arith.constant 0 : i32
    %c0_i32_1 = arith.constant 0 : i32
    return %c0_i32, %c0_i32_0 : i32, i32
  }
  func.func @transform_2(%arg0: i32) -> (i32, i32) {
    %c0_i32 = arith.constant 0 : i32
    %c0_i32_0 = arith.constant 0 : i32
    %c0_i32_1 = arith.constant 0 : i32
    return %c0_i32, %c0_i32_0 : i32, i32
  }
  func.func @transform_3(%arg0: i32) -> (i32, i32) {
    %c0_i32 = arith.constant 0 : i32
    %c0_i32_0 = arith.constant 0 : i32
    %c0_i32_1 = arith.constant 0 : i32
    return %c0_i32, %c0_i32_0 : i32, i32
  }
  func.func @transform_4(%arg0: i32) -> (i32, i32) {
    %c0_i32 = arith.constant 0 : i32
    %c0_i32_0 = arith.constant 0 : i32
    %c0_i32_1 = arith.constant 0 : i32
    return %c0_i32, %c0_i32_0 : i32, i32
  }
  func.func @transform_5(%arg0: i32) -> (i32, i32) {
    %c0_i32 = arith.constant 0 : i32
    %c0_i32_0 = arith.constant 0 : i32
    %c0_i32_1 = arith.constant 0 : i32
    return %c0_i32, %c0_i32_0 : i32, i32
  }
  func.func @transform_6(%arg0: i32) -> (i32, i32) {
    %c0_i32 = arith.constant 0 : i32
    %c0_i32_0 = arith.constant 0 : i32
    %c0_i32_1 = arith.constant 0 : i32
    return %c0_i32, %c0_i32_0 : i32, i32
  }
  func.func @transform_7(%arg0: i32) -> (i32, i32) {
    %c0_i32 = arith.constant 0 : i32
    %c0_i32_0 = arith.constant 0 : i32
    %c0_i32_1 = arith.constant 0 : i32
    return %c0_i32, %c0_i32_0 : i32, i32
  }
  func.func @transform_8(%arg0: i32) -> (i32, i32) {
    %c0_i32 = arith.constant 0 : i32
    %c0_i32_0 = arith.constant 0 : i32
    %c0_i32_1 = arith.constant 0 : i32
    return %c0_i32, %c0_i32_0 : i32, i32
  }
  func.func @transform_9(%arg0: i32) -> (i32, i32) {
    %c0_i32 = arith.constant 0 : i32
    %c0_i32_0 = arith.constant 0 : i32
    return %arg0, %c0_i32 : i32, i32
  }
}

</mosaic_0001>

<bundles_post_ra>
// kernel: tpu_custom_call.1
= control target key start
LH: loop header
LB: loop body
LE: loop exit
PB: predicated region body
PF: predicated region fallthrough
CT: control target
= control target key end

     0   :  { %14 = vsyncpa [#allocation3], 0  ;;  %s1031_s0 = inlined_call_operand.vmem [shape: f32[8,256], index: 0, kind: input, shape index: {}]   ;;  %s1032_s1 = inlined_call_operand.hbm [shape: f32[256,128], index: 1, kind: input, shape index: {}]   ;;  %s1033_s2 = inlined_call_operand.vmem [shape: f32[1,128], index: 2, kind: input, shape index: {}]   ;;  %s1034_s3 = inlined_call_operand.vmem [shape: f32[128,64], index: 3, kind: input, shape index: {}]   ;;  %s1035_s4 = inlined_call_operand.vmem [shape: f32[1,64], index: 4, kind: input, shape index: {}]   ;;  %s1036_s5 = inlined_call_operand.vmem [shape: f32[64,128], index: 5, kind: input, shape index: {}]   ;;  %s1037_s6 = inlined_call_operand.vmem [shape: f32[1,128], index: 6, kind: input, shape index: {}]   ;;  %s1038_s7 = inlined_call_operand.hbm [shape: f32[128,256], index: 7, kind: input, shape index: {}]   ;;  %s1039_s8 = inlined_call_operand.vmem [shape: f32[1,256], index: 8, kind: input, shape index: {}]   ;;  %s1040_s9 = inlined_call_operand.hbm [shape: f32[8,256], index: 9, kind: output, shape index: {}]  }
   0x1   :  { %15 = vsyncpa [#allocation6], 0 }
   0x2   :  { %16 = vsyncpa [#allocation4], 0  ;;  %s833_s30 = smov [#allocation2]   ;;  %s761_s13 = scalar_lea.hbm %s1032_s1, 4096 }
   0x3   :  { %s24_s10 = sshll.u32 %s833_s30, 4  ;;  %p762_p0 = scmp.ne.s32.totalorder %s1032_s1, %s761_s13  ;;  %s25_s10 = int_to_ptr.vmem [resolvable:$true] %s24_s10 }
   0x4   :  { %p765_p1 = scmp.lt.u32.totalorder %s761_s13, %s1032_s1 }
   0x6   :  { %p767_p2 = pnand %p765_p1, %p762_p0 }
   0x8   :  { %770 = shalt.err (!%p767_p2)
}
   0x9   :  { %s771_s18 = scalar_lea.vmem %s25_s10, 4096  ;;  %p776_p4 = scmp.lt.s32.totalorder %s25_s10, %s25_s10 }
   0xa   :  { %p772_p3 = scmp.ne.s32.totalorder %s25_s10, %s771_s18  ;;  %p777_p5 = scmp.lt.s32.totalorder %s771_s18, %s771_s18 }
   0xc   :  { %p778_p6 = por %p777_p5, %p776_p4 }
   0xe   :  { %p779_p7 = pnand %p778_p6, %p772_p3 }
  0x10   :  { %782 = shalt.err (!%p779_p7)
}
  0x11   :  { %s834_s19 = smov 128   ;;  %s835_s20 = smov 8  }
  0x12   :  { %30 = dma.hbm_to_vmem [thread:$0]  %s1032_s1, 4096, %s25_s10, [#allocation3], %s834_s19, %s834_s19, %s835_s20  }
  0x13   :  { %s836_s23 = smov [#allocation5]   ;;  %s783_s27 = scalar_lea.hbm %s1038_s7, 4096 }
  0x14   :  { %s46_s24 = sshll.u32 %s836_s23, 4  ;;  %p784_p8 = scmp.ne.s32.totalorder %s1038_s7, %s783_s27  ;;  %s47_s24 = int_to_ptr.vmem [resolvable:$true] %s46_s24 }
  0x15   :  { %p787_p9 = scmp.lt.u32.totalorder %s783_s27, %s1038_s7 }
  0x17   :  { %p789_p10 = pnand %p787_p9, %p784_p8 }
  0x19   :  { %792 = shalt.err (!%p789_p10)
}
  0x1a   :  { %s793_s12 = scalar_lea.vmem %s47_s24, 4096  ;;  %p798_p12 = scmp.lt.s32.totalorder %s47_s24, %s47_s24 }
  0x1b   :  { %p794_p11 = scmp.ne.s32.totalorder %s47_s24, %s793_s12  ;;  %p799_p13 = scmp.lt.s32.totalorder %s793_s12, %s793_s12 }
  0x1d   :  { %p800_p0 = por %p799_p13, %p798_p12 }
  0x1f   :  { %p801_p1 = pnand %p800_p0, %p794_p11 }
  0x21   :  { %804 = shalt.err (!%p801_p1)
}
  0x22   :  { %s837_s1 = smov 256   ;;  %s838_s10 = smov 16  }
  0x23   :  { %52 = dma.hbm_to_vmem [thread:$0]  %s1038_s7, 4096, %s47_s24, [#allocation6], %s837_s1, %s837_s1, %s838_s10  }
  0x24   :  { %827 = dma.done.wait [#allocation3], 4096  }
  0x25   :  { %828 = vsyncadd [#allocation3], 4294963200 }
  0x26   :  { %829 = dma.done.wait [#allocation6], 4096  }
  0x27   :  { %830 = vsyncadd [#allocation6], 4294963200  ;;  %v79_v0 = vld [vmem:[#allocation2 + $0x80] sm:$0xff]  ;;  %v80_v1 = vld [vmem:[#allocation2 + $0x88] sm:$0xff]  ;;  %v839_v53 = vmov 0.0|0.0   ;;  %vm840_vm0 = vmmov 0  }
  0x28   :  { %v63_v2 = vld [vmem:[#allocation2] sm:$0xff]  ;;  %v631_v3 = vpack.c.bf16 %v80_v1, %v79_v0  ;;  %v64_v4 = vld [vmem:[#allocation2 + $0x8] sm:$0xff]  ;;  %v81_v5 = vld [vmem:[#allocation2 + $0x90] sm:$0xff]  ;;  %663 = vmatprep.subr.bf16.mxu1 %v839_v53  ;;  %vm290_vm1 = vcmask 523264  }
  0x29   :  { %v82_v6 = vld [vmem:[#allocation2 + $0x98] sm:$0xff]  ;;  %v633_v7 = vpack.c.bf16 %v64_v4, %v63_v2  ;;  %v65_v9 = vld [vmem:[#allocation2 + $0x10] sm:$0xff]  ;;  %v83_v11 = vld [vmem:[#allocation2 + $0xa0] sm:$0xff] }
  0x2a   :  { %v635_v8 = vpack.c.bf16 %v82_v6, %v81_v5  ;;  %v66_v10 = vld [vmem:[#allocation2 + $0x18] sm:$0xff]  ;;  %632 = vmatprep.subr.bf16.mxu0 %v631_v3  ;;  %v84_v12 = vld [vmem:[#allocation2 + $0xa8] sm:$0xff]  ;;  %v67_v15 = vld [vmem:[#allocation2 + $0x20] sm:$0xff] }
  0x2b   :  { %634 = vmatpush3.bf16.msra.mxu0 %v633_v7  ;;  %v637_v13 = vpack.c.bf16 %v66_v10, %v65_v9  ;;  %v639_v14 = vpack.c.bf16 %v84_v12, %v83_v11  ;;  %v68_v16 = vld [vmem:[#allocation2 + $0x28] sm:$0xff]  ;;  %v85_v17 = vld [vmem:[#allocation2 + $0xb0] sm:$0xff]  ;;  %v86_v18 = vld [vmem:[#allocation2 + $0xb8] sm:$0xff]  ;;  %v841_v10 = vmov 0.0  }
  0x2c   :  { %636 = vmatprep.subr.bf16.mxu0 %v635_v8  ;;  %v641_v19 = vpack.c.bf16 %v68_v16, %v67_v15  ;;  %v643_v20 = vpack.c.bf16 %v86_v18, %v85_v17  ;;  %v69_v21 = vld [vmem:[#allocation2 + $0x30] sm:$0xff]  ;;  %v70_v22 = vld [vmem:[#allocation2 + $0x38] sm:$0xff]  ;;  %v87_v23 = vld [vmem:[#allocation2 + $0xc0] sm:$0xff]  ;;  %609 = vmatprep.mubr.msk.f32.mxu1 %vm840_vm0, %v841_v10 }
  0x2d   :  { %v88_v24 = vld [vmem:[#allocation2 + $0xc8] sm:$0xff]  ;;  %v645_v26 = vpack.c.bf16 %v70_v22, %v69_v21  ;;  %v71_v28 = vld [vmem:[#allocation2 + $0x40] sm:$0xff]  ;;  %v89_v30 = vld [vmem:[#allocation2 + $0xd0] sm:$0xff] }
  0x2e   :  { %v62_v25 = vld [vmem:[%s1031_s0 + $0x8] sm:$0xff]  ;;  %v647_v27 = vpack.c.bf16 %v88_v24, %v87_v23  ;;  %v90_v31 = vld [vmem:[#allocation2 + $0xd8] sm:$0xff]  ;;  %v73_v34 = vld [vmem:[#allocation2 + $0x50] sm:$0xff] }
  0x2f   :  { %638 = vmatpush3.bf16.msra.mxu0 %v637_v13  ;;  %166 = vmatprep.mubr.f32.mxu0 %v62_v25  ;;  %v72_v29 = vld [vmem:[#allocation2 + $0x48] sm:$0xff]  ;;  %v651_v33 = vpack.c.bf16 %v90_v31, %v89_v30  ;;  %v74_v35 = vld [vmem:[#allocation2 + $0x58] sm:$0xff]  ;;  %v91_v36 = vld [vmem:[#allocation2 + $0xe0] sm:$0xff] }
  0x30   :  { %640 = vmatprep.subr.bf16.mxu0 %v639_v14  ;;  %v649_v32 = vpack.c.bf16 %v72_v29, %v71_v28  ;;  %v92_v37 = vld [vmem:[#allocation2 + $0xe8] sm:$0xff]  ;;  %v653_v38 = vpack.c.bf16 %v74_v35, %v73_v34  ;;  %v75_v40 = vld [vmem:[#allocation2 + $0x60] sm:$0xff]  ;;  %v93_v42 = vld [vmem:[#allocation2 + $0xf0] sm:$0xff] }
  0x31   :  { %v655_v39 = vpack.c.bf16 %v92_v37, %v91_v36  ;;  %v76_v41 = vld [vmem:[#allocation2 + $0x68] sm:$0xff]  ;;  %v94_v43 = vld [vmem:[#allocation2 + $0xf8] sm:$0xff]  ;;  %v77_v46 = vld [vmem:[#allocation2 + $0x70] sm:$0xff] }
  0x32   :  { %v657_v44 = vpack.c.bf16 %v76_v41, %v75_v40  ;;  %v659_v45 = vpack.c.bf16 %v94_v43, %v93_v42  ;;  %v78_v47 = vld [vmem:[#allocation2 + $0x78] sm:$0xff]  ;;  %v61_v49 = vld [vmem:[%s1031_s0] sm:$0xff]  ;;  %v178_v51 = vld [vmem:[%s1034_s3 + $0x8] sm:$0xff] }
  0x33   :  { %642 = vmatpush3.bf16.msra.mxu0 %v641_v19  ;;  %v661_v48 = vpack.c.bf16 %v78_v47, %v77_v46  ;;  %v177_v50 = vld [vmem:[%s1034_s3] sm:$0xff]  ;;  %v179_v54 = vld [vmem:[%s1034_s3 + $0x10] sm:$0xff]  ;;  %v180_v55 = vld [vmem:[%s1034_s3 + $0x18] sm:$0xff] }
  0x34   :  { %644 = vmatprep.subr.bf16.mxu0 %v643_v20  ;;  %v664_v52 = vpack.c.bf16 %v178_v51, %v177_v50  ;;  %v667_v56 = vpack.c.bf16 %v180_v55, %v179_v54  ;;  %v181_v57 = vld [vmem:[%s1034_s3 + $0x20] sm:$0xff]  ;;  %v182_v58 = vld [vmem:[%s1034_s3 + $0x28] sm:$0xff]  ;;  %v183_v60 = vld [vmem:[%s1034_s3 + $0x30] sm:$0xff] }
  0x35   :  { %v670_v59 = vpack.c.bf16 %v182_v58, %v181_v57  ;;  %v184_v61 = vld [vmem:[%s1034_s3 + $0x38] sm:$0xff]  ;;  %v185_v63 = vld [vmem:[%s1034_s3 + $0x40] sm:$0xff]  ;;  %v186_v0 = vld [vmem:[%s1034_s3 + $0x48] sm:$0xff] }
  0x36   :  { %665 = vmatpush3.bf16.msra.mxu1 %v664_v52  ;;  %v673_v62 = vpack.c.bf16 %v184_v61, %v183_v60  ;;  %v676_v1 = vpack.c.bf16 %v186_v0, %v185_v63  ;;  %v187_v2 = vld [vmem:[%s1034_s3 + $0x50] sm:$0xff]  ;;  %v188_v3 = vld [vmem:[%s1034_s3 + $0x58] sm:$0xff]  ;;  %v189_v5 = vld [vmem:[%s1034_s3 + $0x60] sm:$0xff] }
  0x37   :  { %646 = vmatpush3.bf16.msra.mxu0 %v645_v26  ;;  %666 = vmatprep.subr.bf16.mxu1 %v839_v53  ;;  %v679_v4 = vpack.c.bf16 %v188_v3, %v187_v2  ;;  %v190_v6 = vld [vmem:[%s1034_s3 + $0x68] sm:$0xff]  ;;  %v191_v8 = vld [vmem:[%s1034_s3 + $0x70] sm:$0xff]  ;;  %v192_v9 = vld [vmem:[%s1034_s3 + $0x78] sm:$0xff] }
  0x38   :  { %648 = vmatprep.subr.bf16.mxu0 %v647_v27  ;;  %v682_v7 = vpack.c.bf16 %v190_v6, %v189_v5  ;;  %v685_v11 = vpack.c.bf16 %v192_v9, %v191_v8  ;;  %v512_v13 = vld [vmem:[%s1033_s2] ss:$0 sm:$0xff]  ;;  %v276_v23 = vld [vmem:[%s1036_s5 + $0x8] sm:$0xff]  ;;  %v277_v25 = vld [vmem:[%s1036_s5 + $0x10] sm:$0xff] }
  0x39   :  { %v275_v22 = vld [vmem:[%s1036_s5] sm:$0xff]  ;;  %v278_v26 = vld [vmem:[%s1036_s5 + $0x18] sm:$0xff]  ;;  %v280_v29 = vld [vmem:[%s1036_s5 + $0x28] sm:$0xff] }
  0x3a   :  { %668 = vmatpush3.bf16.msra.mxu1 %v667_v56  ;;  %v688_v24 = vpack.c.bf16 %v276_v23, %v275_v22  ;;  %v691_v27 = vpack.c.bf16 %v278_v26, %v277_v25  ;;  %v279_v28 = vld [vmem:[%s1036_s5 + $0x20] sm:$0xff]  ;;  %v281_v31 = vld [vmem:[%s1036_s5 + $0x30] sm:$0xff]  ;;  %v370_v34 = vld [vmem:[#allocation5 + $0x8] sm:$0xff] }
  0x3b   :  { %650 = vmatpush3.bf16.msra.mxu0 %v649_v32  ;;  %669 = vmatprep.subr.bf16.mxu1 %v839_v53  ;;  %v694_v30 = vpack.c.bf16 %v280_v29, %v279_v28  ;;  %v282_v32 = vld [vmem:[%s1036_s5 + $0x38] sm:$0xff]  ;;  %v513_v37 = vld [vmem:[%s1035_s4] ss:$0 sm:$0xff]  ;;  %v371_v47 = vld [vmem:[#allocation5 + $0x10] sm:$0xff] }
  0x3c   :  { %652 = vmatprep.subr.bf16.mxu0 %v651_v33  ;;  %v697_v33 = vpack.c.bf16 %v282_v32, %v281_v31  ;;  %v372_v35 = vld [vmem:[#allocation5 + $0x18] sm:$0xff]  ;;  %v369_v46 = vld [vmem:[#allocation5] sm:$0xff]  ;;  %v378_v55 = vld [vmem:[#allocation5 + $0x48] sm:$0xff] }
  0x3d   :  { %v699_v36 = vpack.c.bf16 %v372_v35, %v370_v34  ;;  %v376_v50 = vld [vmem:[#allocation5 + $0x38] sm:$0xff]  ;;  %v373_v52 = vld [vmem:[#allocation5 + $0x20] sm:$0xff]  ;;  %v382_v61 = vld [vmem:[#allocation5 + $0x68] sm:$0xff] }
  0x3e   :  { %671 = vmatpush3.bf16.msra.mxu1 %v670_v59  ;;  %v380_v56 = vld [vmem:[#allocation5 + $0x58] sm:$0xff]  ;;  %v377_v58 = vld [vmem:[#allocation5 + $0x40] sm:$0xff]  ;;  %v379_v59 = vld [vmem:[#allocation5 + $0x50] sm:$0xff] }
  0x3f   :  { %654 = vmatpush3.bf16.msra.mxu0 %v653_v38  ;;  %672 = vmatprep.subr.bf16.mxu1 %v839_v53  ;;  %v707_v57 = vpack.c.bf16 %v380_v56, %v378_v55  ;;  %v709_v60 = vpack.c.bf16 %v379_v59, %v377_v58  ;;  %v381_v0 = vld [vmem:[#allocation5 + $0x60] sm:$0xff]  ;;  %v386_v3 = vld [vmem:[#allocation5 + $0x88] sm:$0xff]  ;;  %v399_v25 = vld [vmem:[#allocation5 + $0xf0] sm:$0xff] }
  0x40   :  { %656 = vmatprep.subr.bf16.mxu0 %v655_v39  ;;  %v385_v6 = vld [vmem:[#allocation5 + $0x80] sm:$0xff]  ;;  %v390_v9 = vld [vmem:[#allocation5 + $0xa8] sm:$0xff] }
  0x42   :  { %674 = vmatpush3.bf16.msra.mxu1 %v673_v62  ;;  %v384_v62 = vld [vmem:[#allocation5 + $0x78] sm:$0xff] }
  0x43   :  { %658 = vmatpush3.bf16.msra.mxu0 %v657_v44  ;;  %675 = vmatprep.subr.bf16.mxu1 %v839_v53  ;;  %v711_v63 = vpack.c.bf16 %v384_v62, %v382_v61 }
  0x44   :  { %660 = vmatprep.subr.bf16.mxu0 %v659_v45 }
  0x46   :  { %677 = vmatpush3.bf16.msra.mxu1 %v676_v1  ;;  %v383_v1 = vld [vmem:[#allocation5 + $0x70] sm:$0xff] }
  0x47   :  { %662 = vmatpush3.bf16.msra.mxu0 %v661_v48  ;;  %678 = vmatprep.subr.bf16.mxu1 %v839_v53  ;;  %v701_v48 = vpack.c.bf16 %v371_v47, %v369_v46  ;;  %v713_v2 = vpack.c.bf16 %v383_v1, %v381_v0 }
  0x48   :  { %687 = vmatprep.subr.bf16.mxu0 %v839_v53 }
  0x4a   :  { %167 = vmatmul.mubr.f32.vlgmr.msra.gmra.mrb[0].mxu0 %v61_v49  ;;  %680 = vmatpush3.bf16.msra.mxu1 %v679_v4  ;;  %v374_v49 = vld [vmem:[#allocation5 + $0x28] sm:$0xff]  ;;  %v388_v4 = vld [vmem:[#allocation5 + $0x98] sm:$0xff] }
  0x4b   :  { %681 = vmatprep.subr.bf16.mxu1 %v839_v53  ;;  %628 = vmatprep.mubr.msk.f32.mxu0 %vm840_vm0, %v841_v10  ;;  %v703_v51 = vpack.c.bf16 %v376_v50, %v374_v49  ;;  %v715_v5 = vpack.c.bf16 %v388_v4, %v386_v3 }
  0x4c   :  { %689 = vmatpush3.bf16.msra.mxu0 %v688_v24  ;;  %v397_v24 = vld [vmem:[#allocation5 + $0xe0] sm:$0xff] }
  0x4d   :  { %690 = vmatprep.subr.bf16.mxu0 %v839_v53  ;;  %v729_v26 = vpack.c.bf16 %v399_v25, %v397_v24 }
  0x4e   :  { %683 = vmatpush3.bf16.msra.mxu1 %v682_v7  ;;  %v387_v7 = vld [vmem:[#allocation5 + $0x90] sm:$0xff] }
  0x4f   :  { %684 = vmatprep.subr.bf16.mxu1 %v839_v53  ;;  %v717_v8 = vpack.c.bf16 %v387_v7, %v385_v6 }
  0x50   :  { %692 = vmatpush3.bf16.msra.mxu0 %v691_v27  ;;  %v514_v27 = vld [vmem:[%s1037_s6] ss:$0 sm:$0xff]  ;;  %s842_s6 = smov [#allocation7]  }
  0x51   :  { %693 = vmatprep.subr.bf16.mxu0 %v839_v53 }
  0x52   :  { %686 = vmatpush3.bf16.msra.mxu1 %v685_v11 }
  0x53   :  { %700 = vmatprep.subr.bf16.mxu1 %v699_v36  ;;  %v403_v36 = vlaneseq }
  0x54   :  { %695 = vmatpush3.bf16.msra.mxu0 %v694_v30 }
  0x55   :  { %696 = vmatprep.subr.bf16.mxu0 %v839_v53  ;;  %v375_v53 = vld [vmem:[#allocation5 + $0x30] sm:$0xff] }
  0x56   :  { %v705_v54 = vpack.c.bf16 %v375_v53, %v373_v52 }
  0x58   :  { %698 = vmatpush3.bf16.msra.mxu0 %v697_v33 }
 0x11d   :  { %v548_v12 = vpop.f32.mrb[0].mxu0 }
 0x11e   :  { %v549_v14 = vpop.f32.mrb[1].mxu0 }
 0x11f   :  { %v550_v15 = vadd.f32 %v549_v14, %v548_v12  ;;  %v389_v12 = vld [vmem:[#allocation5 + $0xa0] sm:$0xff] }
 0x121   :  { %v169_v16 = vadd.f32 %v550_v15, %v512_v13  ;;  %v391_v13 = vld [vmem:[#allocation5 + $0xb0] sm:$0xff]  ;;  %v394_v15 = vld [vmem:[#allocation5 + $0xc8] sm:$0xff] }
 0x122   :  { %v721_v14 = vpack.c.bf16 %v391_v13, %v389_v12 }
 0x123   :  { %v172_v17 = vsub.f32 0.0, %v169_v16  ;;  %v396_v16 = vld [vmem:[#allocation5 + $0xd8] sm:$0xff] }
 0x125   :  { %v173_v18 = vmul.f32 1.442695, %v172_v17  ;;  %v393_v17 = vld [vmem:[#allocation5 + $0xc0] sm:$0xff] }
 0x127   :  { %741 = vpow2.f32 %v173_v18  ;;  %v723_v18 = vpack.c.bf16 %v396_v16, %v394_v15 }
 0x131   :  { %v742_v19 = vpop.eup %741 }
 0x132   :  { %v175_v20 = vadd.f32 1.0, %v742_v19  ;;  %v395_v19 = vld [vmem:[#allocation5 + $0xd0] sm:$0xff] }
 0x133   :  { %v725_v22 = vpack.c.bf16 %v395_v19, %v393_v17 }
 0x134   :  { %743 = vrcp.f32 %v175_v20  ;;  %v398_v20 = vld [vmem:[#allocation5 + $0xe8] sm:$0xff] }
 0x13e   :  { %v744_v21 = vpop.eup %743 }
 0x13f   :  { %610 = vmatmul.mubr.f32.vlgmr.msra.gmra.mrb[0].mxu1 %v744_v21  ;;  %v400_v21 = vld [vmem:[#allocation5 + $0xf8] sm:$0xff] }
 0x140   :  { %477 = vmatprep.mubr.f32.mxu1 %v841_v10  ;;  %702 = vmatpush1.bf16.msra.mxu1 %v701_v48  ;;  %v392_v10 = vld [vmem:[#allocation5 + $0xb8] sm:$0xff]  ;;  %v727_v23 = vpack.c.bf16 %v400_v21, %v398_v20 }
 0x141   :  { %704 = vmatprep.subr.bf16.mxu1 %v703_v51  ;;  %v719_v11 = vpack.c.bf16 %v392_v10, %v390_v9 }
 0x144   :  { %706 = vmatpush1.bf16.msra.mxu1 %v705_v54 }
 0x145   :  { %708 = vmatprep.subr.bf16.mxu1 %v707_v57 }
 0x148   :  { %710 = vmatpush1.bf16.msra.mxu1 %v709_v60 }
 0x149   :  { %712 = vmatprep.subr.bf16.mxu1 %v711_v63 }
 0x14c   :  { %714 = vmatpush1.bf16.msra.mxu1 %v713_v2 }
 0x14d   :  { %716 = vmatprep.subr.bf16.mxu1 %v715_v5 }
 0x150   :  { %718 = vmatpush1.bf16.msra.mxu1 %v717_v8 }
 0x151   :  { %720 = vmatprep.subr.bf16.mxu1 %v719_v11 }
 0x154   :  { %722 = vmatpush1.bf16.msra.mxu1 %v721_v14 }
 0x155   :  { %724 = vmatprep.subr.bf16.mxu1 %v723_v18 }
 0x158   :  { %726 = vmatpush1.bf16.msra.mxu1 %v725_v22 }
 0x159   :  { %728 = vmatprep.subr.bf16.mxu1 %v727_v23 }
 0x15c   :  { %730 = vmatpush1.bf16.msra.mxu1 %v729_v26 }
 0x212   :  { %v266_v38 = vpop.f32.mrb[0].mxu1 }
 0x213   :  { %v267_v39 = vadd.f32 %v513_v37, %v266_v38  ;;  %v611_v40 = vpop.f32.mrb[1].mxu1  ;;  %v404_v37 = vshrl.u32 %v403_v36, 7 }
 0x215   :  { %v270_v41 = vsub.f32 0.0, %v267_v39  ;;  %v405_v38 = vsub.s32 0, %v404_v37  ;;  %v401_v39 = vld [vmem:[%s1039_s8] sm:$0x3]  ;;  %v409_v40 = vsub.s32 1, %v404_v37  ;;  %s502_s8 = sshll.u32 %s842_s6, 4  ;;  %s503_s8 = int_to_ptr.vmem [resolvable:$true] %s502_s8 }
 0x216   :  { %s805_s22 = scalar_lea.vmem %s503_s8, 256  ;;  %p810_p3 = scmp.lt.s32.totalorder %s503_s8, %s503_s8 }
 0x217   :  { %v271_v42 = vmul.f32 1.442695, %v270_v41  ;;  %v406_v41 = vrot.slane %v401_v39, %v405_v38  ;;  %p806_p2 = scmp.ne.s32.totalorder %s503_s8, %s805_s22  ;;  %p811_p4 = scmp.lt.s32.totalorder %s805_s22, %s805_s22 }
 0x219   :  { %745 = vpow2.f32 %v271_v42  ;;  %v410_v42 = vrot.slane %v401_v39, %v409_v40  ;;  %p812_p5 = por %p811_p4, %p810_p3 }
 0x21b   :  { %p813_p6 = pnand %p812_p5, %p806_p2 }
 0x223   :  { %v746_v43 = vpop.eup %745 }
 0x224   :  { %v273_v44 = vadd.f32 1.0, %v746_v43 }
 0x226   :  { %747 = vrcp.f32 %v273_v44 }
 0x230   :  { %v748_v45 = vpop.eup %747 }
 0x231   :  { %629 = vmatmul.mubr.msk.f32.vlgmr.msra.gmra.mrb[2].mxu0 %vm290_vm1, %v748_v45 }
 0x304   :  { %v360_v28 = vpop.f32.mrb[2].mxu0 }
 0x305   :  { %v361_v29 = vadd.f32 %v514_v27, %v360_v28  ;;  %v630_v30 = vpop.f32.mrb[3].mxu0 }
 0x307   :  { %v364_v31 = vsub.f32 0.0, %v361_v29 }
 0x309   :  { %v365_v32 = vmul.f32 1.442695, %v364_v31 }
 0x30b   :  { %749 = vpow2.f32 %v365_v32 }
 0x315   :  { %v750_v33 = vpop.eup %749 }
 0x316   :  { %v367_v34 = vadd.f32 1.0, %v750_v33 }
 0x318   :  { %751 = vrcp.f32 %v367_v34 }
 0x322   :  { %v752_v35 = vpop.eup %751 }
 0x323   :  { %478 = vmatmul.mubr.f32.vlgmr.msra.gmra.mrb[2].mxu1 %v752_v35 }
 0x3f6   :  { %v479_v43 = vpop.f32.mrb[2].mxu1 }
 0x3f7   :  { %v480_v44 = vadd.f32 %v479_v43, %v406_v41  ;;  %v481_v45 = vpop.f32.mrb[3].mxu1 }
 0x3f8   :  { %v482_v46 = vadd.f32 %v481_v45, %v410_v42 }
 0x3f9   :  { %v484_v47 = vsub.f32 0.0, %v480_v44 }
 0x3fa   :  { %v485_v48 = vsub.f32 0.0, %v482_v46 }
 0x3fb   :  { %v486_v49 = vmul.f32 1.442695, %v484_v47 }
 0x3fc   :  { %v488_v50 = vmul.f32 1.442695, %v485_v48 }
 0x3fd   :  { %753 = vpow2.f32 %v486_v49 }
 0x3fe   :  { %755 = vpow2.f32 %v488_v50 }
 0x407   :  { %v754_v51 = vpop.eup %753 }
 0x408   :  { %v756_v52 = vpop.eup %755  ;;  %v490_v53 = vadd.f32 1.0, %v754_v51 }
 0x409   :  { %v491_v54 = vadd.f32 1.0, %v756_v52 }
 0x40a   :  { %757 = vrcp.f32 %v490_v53 }
 0x40b   :  { %759 = vrcp.f32 %v491_v54 }
 0x414   :  { %v758_v55 = vpop.eup %757 }
 0x415   :  { %v760_v56 = vpop.eup %759  ;;  %494 = vst [vmem:[#allocation7] sm:$0xff] %v758_v55 }
 0x416   :  { %495 = vst [vmem:[#allocation7 + $0x8] sm:$0xff] %v760_v56 }
 0x417   :  { %816 = shalt.err (!%p813_p6)
}
 0x418   :  { %s817_s24 = scalar_lea.hbm %s1040_s9, 256 }
 0x419   :  { %p818_p7 = scmp.ne.s32.totalorder %s1040_s9, %s817_s24  ;;  %p821_p8 = scmp.lt.u32.totalorder %s817_s24, %s1040_s9 }
 0x41b   :  { %p823_p9 = pnand %p821_p8, %p818_p7 }
 0x41d   :  { %826 = shalt.err (!%p823_p9)
}
 0x41e   :  { %505 = dma.vmem_to_hbm [thread:$0]  %s503_s8, 256, %s1040_s9, [#allocation4]  }
 0x41f   :  { %831 = dma.done.wait [#allocation4], 256  }
 0x420   :  { %832 = vsyncadd [#allocation4], 4294967040 }
 0x421   :  { %509 = vsyncpa [#allocation3], 1 }
 0x422   :  { %510 = vsyncpa [#allocation6], 1 }
 0x423   :  { %511 = vsyncpa [#allocation4], 1 }

</bundles_post_ra>
